<compile_context>
chip_gen: v6e
topology: v6e:2x2x1
jax: 0.10.0
libtpu: 0.0.40
codegen_flags: <defaults>
</compile_context>

<pallas_src>
import functools
import math

import jax
import jax.numpy as jnp
from jax import lax
from jax.experimental import pallas as pl
from jax.experimental.pallas import tpu as pltpu


_LIVE_F32_TEMPS = 8  # conservative count of concurrently-live f32 (C, T) temps


def _cdiv(a, b):
    return -(-a // b)


def _vmem_capacity_bytes():
    """Physical VMEM of this generation (v5e/v6e: 128 MiB, v7x: 64 MiB)."""
    try:
        cap = getattr(pltpu.get_tpu_info(), "vmem_capacity_bytes", None)
        if cap:
            return int(cap)
    except Exception:
        pass
    return 64 << 20  # conservative fallback (v7x physical VMEM)


def _pick_tile(length, c, itemsize, vmem_cap, n_outer, multiple, hard_multiple):
    """Tile length along the per-sample axis.

    Sized so (double-buffered input block + ~_LIVE_F32_TEMPS live f32
    temporaries) fits in ~half of this generation's VMEM, and capped so the
    total grid has >= ~4 steps (v7x megacore + pipeline depth).
    `multiple` is the preferred granularity, `hard_multiple` the minimum legal
    one (128 on the lane axis, 8 on the sublane axis)."""
    if length <= multiple:
        return length  # block dim == full array dim is always legal
    per_row = c * (2 * itemsize + _LIVE_F32_TEMPS * 4) + 16
    t = (vmem_cap // 2) // max(per_row, 1)
    min_tiles = max(1, 4 // max(n_outer, 1))
    t = min(t, _cdiv(length, min_tiles), length)
    gran = multiple if t >= multiple else hard_multiple
    t = max(gran, (t // gran) * gran)
    return length if t >= length else t


def _focal_modulate(logpt, pt, gamma):
    """loss = -(1 - pt)**gamma * logpt with integer-gamma fast paths."""
    g = float(gamma)
    if g == 0.0:
        return -logpt                        # (1-pt)**0 == 1: drop the factor
    one_m_pt = jnp.maximum(1.0 - pt, 0.0)    # clamp: no NaN from pow
    if g == round(g) and 1 <= int(round(g)) <= 8:
        f = one_m_pt
        for _ in range(int(round(g)) - 1):   # plain VPU multiplies, no pow
            f = f * one_m_pt
    else:
        f = one_m_pt ** g                    # non-integer gamma: pow fallback
    return -(f * logpt)


def _tile_loss_class_major(x, tgt, alpha, *, gamma, use_alpha, valid):
    """x: (C, T), tgt: (1, T) int32, alpha: (C, 1) f32, valid: (1, T) bool|None.

    Classes live on the sublane axis, samples on the 128-wide lane axis.
    Returns the f32 sum of the focal loss over the T samples of this tile."""
    x = x.astype(jnp.float32)
    c, t = x.shape
    m = jnp.max(x, axis=0, keepdims=True)                 # (1, T)
    z = x - m
    p = jnp.exp(z)                                        # one exp / element
    s = jnp.sum(p, axis=0, keepdims=True)                 # (1, T)
    onehot = lax.broadcasted_iota(jnp.int32, (c, t), 0) == tgt
    z_t = jnp.sum(jnp.where(onehot, z, 0.0), axis=0, keepdims=True)
    logpt = z_t - jnp.log(s)                              # gathered log_softmax
    pt = jnp.exp(logpt)                                   # per-row exp (1/C cost)
    if use_alpha:                                         # static branch
        at = jnp.sum(jnp.where(onehot, alpha, 0.0), axis=0, keepdims=True)
        logpt = logpt * at                                # alpha on logpt only
    loss = _focal_modulate(logpt, pt, gamma)              # (1, T)
    if valid is not None:
        loss = jnp.where(valid, loss, 0.0)                # select, never multiply
    return jnp.sum(loss)


def _focal_kernel_cs(x_ref, tgt_ref, alpha_ref, out_ref, *,
                     gamma, use_alpha, n_cols, need_mask):
    """Class-on-sublanes kernel.
    x: (1, C, T)  tgt: (1, 1, T)  alpha: (C, 1)  out: (1, 1, 8, 128)."""
    x = x_ref[0]                                   # (C, T)
    tgt = tgt_ref[0]                               # (1, T) int32
    alpha = alpha_ref[...].astype(jnp.float32)     # (C, 1)
    t = x.shape[-1]
    valid = None
    if need_mask:                                  # only if tile doesn't divide
        col = pl.program_id(1) * t + lax.broadcasted_iota(jnp.int32, (1, t), 1)
        valid = col < n_cols
    tile_sum = _tile_loss_class_major(x, tgt, alpha, gamma=gamma,
                                      use_alpha=use_alpha, valid=valid)
    out_ref[...] = jnp.broadcast_to(tile_sum.reshape(1, 1, 1, 1), out_ref.shape)


def _focal_kernel_rm(x_ref, tgt_ref, alpha_ref, out_ref, *,
                     gamma, use_alpha, n_rows, need_mask):
    """Row-major kernel (C >= 128, classes lane-dense).
    x: (TM, C)  tgt: (TM, 1)  alpha: (1, C)  out: (1, 8, 128)."""
    x = x_ref[...].astype(jnp.float32)
    tgt = tgt_ref[...]
    alpha = alpha_ref[...].astype(jnp.float32)
    tm, c = x.shape
    m = jnp.max(x, axis=1, keepdims=True)
    z = x - m
    p = jnp.exp(z)
    s = jnp.sum(p, axis=1, keepdims=True)
    onehot = lax.broadcasted_iota(jnp.int32, (tm, c), 1) == tgt
    z_t = jnp.sum(jnp.where(onehot, z, 0.0), axis=1, keepdims=True)
    logpt = z_t - jnp.log(s)
    pt = jnp.exp(logpt)
    if use_alpha:
        at = jnp.sum(jnp.where(onehot, alpha, 0.0), axis=1, keepdims=True)
        logpt = logpt * at
    loss = _focal_modulate(logpt, pt, gamma)               # (TM, 1)
    if need_mask:
        row = pl.program_id(0) * tm + lax.broadcasted_iota(jnp.int32, (tm, 1), 0)
        loss = jnp.where(row < n_rows, loss, 0.0)
    out_ref[...] = jnp.broadcast_to(jnp.sum(loss).reshape(1, 1, 1), out_ref.shape)


def _call_class_major(x3, tgt3, alpha_vec, *, gamma, use_alpha, size_average, tile):
    """x3: (B, C, L) logits (class on sublanes per block); tgt3: (B, 1, L)."""
    b, c, length = x3.shape
    itemsize = jnp.dtype(x3.dtype).itemsize
    vmem_cap = _vmem_capacity_bytes()
    tl = tile if tile is not None else _pick_tile(
        length, c, itemsize, vmem_cap, n_outer=b, multiple=512, hard_multiple=128)
    n_tiles = _cdiv(length, tl)
    need_mask = (length % tl) != 0
    kernel = functools.partial(_focal_kernel_cs, gamma=float(gamma),
                               use_alpha=use_alpha, n_cols=length,
                               need_mask=need_mask)
    partials = pl.pallas_call(
        kernel,
        out_shape=jax.ShapeDtypeStruct((b, n_tiles, 8, 128), jnp.float32),
        grid_spec=pltpu.PrefetchScalarGridSpec(
            num_scalar_prefetch=0,
            grid=(b, n_tiles),
            in_specs=[
                pl.BlockSpec((1, c, tl), lambda i, j: (i, 0, j)),
                pl.BlockSpec((1, 1, tl), lambda i, j: (i, 0, j)),
                pl.BlockSpec((c, 1), lambda i, j: (0, 0)),
            ],
            out_specs=pl.BlockSpec((1, 1, 8, 128), lambda i, j: (i, j, 0, 0)),
        ),
        compiler_params=pltpu.CompilerParams(
            dimension_semantics=("parallel", "parallel"),
            vmem_limit_bytes=int(vmem_cap * 0.85),
        ),
    )(x3, tgt3, alpha_vec.reshape(c, 1))
    total = jnp.sum(partials[:, :, 0, 0])        # tree-reduce per-tile partials
    if size_average:
        return total / jnp.float32(b * length)
    return total


def _call_row_major(x2d, tgt, alpha_vec, *, gamma, use_alpha, size_average, tile):
    """x2d: (M, C) logits with C >= 128 (classes lane-dense); tgt: (M,)."""
    m_rows, c = x2d.shape
    itemsize = jnp.dtype(x2d.dtype).itemsize
    vmem_cap = _vmem_capacity_bytes()
    tm = tile if tile is not None else _pick_tile(
        m_rows, c, itemsize, vmem_cap, n_outer=1, multiple=256, hard_multiple=8)
    n_tiles = _cdiv(m_rows, tm)
    need_mask = (m_rows % tm) != 0
    kernel = functools.partial(_focal_kernel_rm, gamma=float(gamma),
                               use_alpha=use_alpha, n_rows=m_rows,
                               need_mask=need_mask)
    partials = pl.pallas_call(
        kernel,
        out_shape=jax.ShapeDtypeStruct((n_tiles, 8, 128), jnp.float32),
        grid_spec=pltpu.PrefetchScalarGridSpec(
            num_scalar_prefetch=0,
            grid=(n_tiles,),
            in_specs=[
                pl.BlockSpec((tm, c), lambda i: (i, 0)),
                pl.BlockSpec((tm, 1), lambda i: (i, 0)),
                pl.BlockSpec((1, c), lambda i: (0, 0)),
            ],
            out_specs=pl.BlockSpec((1, 8, 128), lambda i: (i, 0, 0)),
        ),
        compiler_params=pltpu.CompilerParams(
            dimension_semantics=("parallel",),
            vmem_limit_bytes=int(vmem_cap * 0.85),
        ),
    )(x2d, tgt.reshape(m_rows, 1), alpha_vec.reshape(1, c))
    total = jnp.sum(partials[:, 0, 0])
    if size_average:
        return total / jnp.float32(m_rows)
    return total


def focal_loss(logits, target, *, gamma=0.0, alpha=None, size_average=True,
               tile=None):
    """Focal loss matching the PyTorch FocalLoss.forward semantics.

    logits: (N, C, *spatial) or (M, C); bf16 accepted (kernel upcasts to f32).
    """
    c = logits.shape[1] if logits.ndim > 2 else logits.shape[-1]

    # alpha handling mirrors the PyTorch module
    if alpha is None:
        alpha_vec = jnp.ones((c,), jnp.float32)   # placeholder, never read
        use_alpha = False
    elif isinstance(alpha, (float, int)):
        assert c == 2, "scalar alpha means [alpha, 1-alpha]: requires C == 2"
        alpha_vec = jnp.array([float(alpha), 1.0 - float(alpha)], jnp.float32)
        use_alpha = True
    else:
        alpha_vec = jnp.asarray(alpha, jnp.float32).reshape(-1)
        assert alpha_vec.shape[0] == c, "alpha list must have C entries"
        use_alpha = True

    kw = dict(gamma=gamma, use_alpha=use_alpha, size_average=size_average,
              tile=tile)
    tgt_flat = target.reshape(-1).astype(jnp.int32)

    if logits.ndim > 2:
        n = logits.shape[0]
        hw = math.prod(logits.shape[2:])
        if c < 128:
            if hw >= 1024 or (hw >= 128 and n <= 8):
                # zero-copy: keep native NCHW layout, tile each (C, HW) slab
                x3 = logits.reshape(n, c, hw)
                tgt3 = tgt_flat.reshape(n, 1, hw)
            else:
                # single transpose pass: (N, C, HW) -> (C, N*HW); column order
                # n*HW + hw matches target.reshape(-1)
                x3 = jnp.moveaxis(logits.reshape(n, c, hw), 0, 1).reshape(1, c, n * hw)
                tgt3 = tgt_flat.reshape(1, 1, n * hw)
            return _call_class_major(x3, tgt3, alpha_vec, **kw)
        # many classes: same row flattening as the PyTorch view/transpose
        x2d = jnp.moveaxis(logits.reshape(n, c, hw), 1, 2).reshape(n * hw, c)
        return _call_row_major(x2d, tgt_flat, alpha_vec, **kw)

    m_rows = logits.shape[0]
    if c < 128:
        x3 = logits.T.reshape(1, c, m_rows)        # one transpose pass
        tgt3 = tgt_flat.reshape(1, 1, m_rows)
        return _call_class_major(x3, tgt3, alpha_vec, **kw)
    return _call_row_major(logits, tgt_flat, alpha_vec, **kw)


def _focal_loss_ref(logits, target, *, gamma, alpha, size_average):
    """Pure-JAX reference with the same semantics as the PyTorch module."""
    if logits.ndim > 2:
        n, c = logits.shape[0], logits.shape[1]
        x = jnp.moveaxis(logits.reshape(n, c, -1), 1, 2).reshape(-1, c)
    else:
        x = logits
    t = target.reshape(-1)
    logp = jax.nn.log_softmax(x.astype(jnp.float32), axis=1)
    logpt = jnp.take_along_axis(logp, t[:, None], axis=1)[:, 0]
    pt = jnp.exp(logpt)
    if alpha is None:
        at = jnp.ones_like(pt)
    elif isinstance(alpha, (float, int)):
        at = jnp.array([alpha, 1.0 - alpha], jnp.float32)[t]
    else:
        at = jnp.asarray(alpha, jnp.float32)[t]
    loss = -((1.0 - pt) ** gamma) * (logpt * at)
    return loss.mean() if size_average else loss.sum()


if __name__ == "__main__":
    key = jax.random.PRNGKey(0)
    k1, k2, k3, k4, k5, k6, k7, k8 = jax.random.split(key, 8)

    # Case 1: NCHW, small C -> zero-copy native class-on-sublane path
    N, C, H, W = 2, 4, 16, 16
    logits = jax.random.normal(k1, (N, C, H, W), jnp.float32)
    target = jax.random.randint(k2, (N, H, W), 0, C)
    loss = jax.block_until_ready(
        focal_loss(logits, target, gamma=2.0, alpha=[0.1, 0.2, 0.3, 0.4],
                   size_average=True))
    ref = _focal_loss_ref(logits, target, gamma=2.0, alpha=[0.1, 0.2, 0.3, 0.4],
                          size_average=True)
    assert jnp.allclose(loss, ref, atol=1e-4, rtol=1e-4), (loss, ref)

    # Case 1b: gamma=0 / no alpha -> factor-free + alpha-free specializations
    loss0 = jax.block_until_ready(
        focal_loss(logits, target, gamma=0.0, alpha=None, size_average=True))
    ref0 = _focal_loss_ref(logits, target, gamma=0.0, alpha=None,
                           size_average=True)
    assert jnp.allclose(loss0, ref0, atol=1e-4, rtol=1e-4), (loss0, ref0)

    # Case 2: C = 128 -> row-major path, sum reduction
    N2, C2, H2, W2 = 2, 128, 4, 4
    logits2 = jax.random.normal(k3, (N2, C2, H2, W2), jnp.float32)
    target2 = jax.random.randint(k4, (N2, H2, W2), 0, C2)
    loss2 = jax.block_until_ready(
        focal_loss(logits2, target2, gamma=2.0, alpha=None, size_average=False))
    ref2 = _focal_loss_ref(logits2, target2, gamma=2.0, alpha=None,
                           size_average=False)
    assert jnp.allclose(loss2, ref2, atol=1e-3, rtol=1e-4), (loss2, ref2)

    # Case 3: 2-D input, C=2 with scalar alpha ([alpha, 1-alpha])
    logits3 = jax.random.normal(k5, (8, 2), jnp.float32)
    target3 = jax.random.randint(k6, (8,), 0, 2)
    loss3 = jax.block_until_ready(
        focal_loss(logits3, target3, gamma=2.0, alpha=0.25, size_average=True))
    ref3 = _focal_loss_ref(logits3, target3, gamma=2.0, alpha=0.25,
                           size_average=True)
    assert jnp.allclose(loss3, ref3, atol=1e-4, rtol=1e-4), (loss3, ref3)

    # Case 4: non-dividing tile -> exercises the no-padding in-kernel row mask
    logits4 = jax.random.normal(k7, (700, 4), jnp.float32)
    target4 = jax.random.randint(k8, (700,), 0, 4)
    loss4 = jax.block_until_ready(
        focal_loss(logits4, target4, gamma=3.0, alpha=None, size_average=True,
                   tile=512))
    ref4 = _focal_loss_ref(logits4, target4, gamma=3.0, alpha=None,
                           size_average=True)
    assert jnp.allclose(loss4, ref4, atol=1e-4, rtol=1e-4), (loss4, ref4)

    print("KERNEL_OK")
</pallas_src>

<mosaic_0001>
module attributes {stable_mosaic.version = 11 : i64} {
  func.func @_focal_kernel_cs(%arg0: i32, %arg1: i32, %arg2: memref<1x4x256xf32, #tpu.memory_space<vmem>>, %arg3: memref<1x1x256xi32, #tpu.memory_space<vmem>>, %arg4: memref<4x1xf32, #tpu.memory_space<vmem>>, %arg5: memref<1x1x8x128xf32, #tpu.memory_space<vmem>>) attributes {dimension_semantics = [#tpu.dimension_semantics<parallel>, #tpu.dimension_semantics<parallel>], iteration_bounds = array<i64: 2, 1>, scalar_prefetch = 0 : i64, scratch_operands = 0 : i64, tpu.core_type = #tpu.core_type<tc>, window_params = [{transform_indices = @transform_0, window_bounds = array<i64: 1, 4, 256>}, {transform_indices = @transform_1, window_bounds = array<i64: 1, 1, 256>}, {pipeline_mode = #tpu.pipeline_mode<synchronous>, transform_indices = @transform_2, window_bounds = array<i64: 4, 1>}, {transform_indices = @transform_3, window_bounds = array<i64: 1, 1, 8, 128>}]} {
    %c0 = arith.constant 0 : index
    %c0_0 = arith.constant 0 : index
    %c0_1 = arith.constant 0 : index
    %0 = vector.load %arg2[%c0, %c0_0, %c0_1] : memref<1x4x256xf32, #tpu.memory_space<vmem>>, vector<1x4x256xf32>
    %1 = vector.shape_cast %0 : vector<1x4x256xf32> to vector<4x256xf32>
    %c0_2 = arith.constant 0 : index
    %c0_3 = arith.constant 0 : index
    %c0_4 = arith.constant 0 : index
    %2 = vector.load %arg3[%c0_2, %c0_3, %c0_4] : memref<1x1x256xi32, #tpu.memory_space<vmem>>, vector<1x1x256xi32>
    %3 = vector.shape_cast %2 : vector<1x1x256xi32> to vector<1x256xi32>
    %c0_5 = arith.constant 0 : index
    %c0_6 = arith.constant 0 : index
    %4 = vector.load %arg4[%c0_5, %c0_6] : memref<4x1xf32, #tpu.memory_space<vmem>>, vector<4x1xf32>
    %cst = arith.constant dense<0xFF800000> : vector<256xf32>
    %5 = vector.multi_reduction <maximumf>, %1, %cst [0] : vector<4x256xf32> to vector<256xf32>
    %6 = vector.shape_cast %5 : vector<256xf32> to vector<1x256xf32>
    %7 = vector.broadcast %6 : vector<1x256xf32> to vector<4x256xf32>
    %8 = arith.subf %1, %7 : vector<4x256xf32>
    %9 = math.exp %8 : vector<4x256xf32>
    %cst_7 = arith.constant dense<0.000000e+00> : vector<256xf32>
    %10 = vector.multi_reduction <add>, %9, %cst_7 [0] : vector<4x256xf32> to vector<256xf32>
    %11 = vector.shape_cast %10 : vector<256xf32> to vector<1x256xf32>
    %12 = tpu.iota {dimensions = array<i32: 0>} : vector<4x256xi32>
    %13 = vector.broadcast %3 : vector<1x256xi32> to vector<4x256xi32>
    %14 = arith.cmpi eq, %12, %13 : vector<4x256xi32>
    %cst_8 = arith.constant 0.000000e+00 : f32
    %15 = vector.broadcast %cst_8 : f32 to vector<4x256xf32>
    %16 = arith.select %14, %8, %15 : vector<4x256xi1>, vector<4x256xf32>
    %cst_9 = arith.constant dense<0.000000e+00> : vector<256xf32>
    %17 = vector.multi_reduction <add>, %16, %cst_9 [0] : vector<4x256xf32> to vector<256xf32>
    %18 = vector.shape_cast %17 : vector<256xf32> to vector<1x256xf32>
    %19 = math.log %11 : vector<1x256xf32>
    %20 = arith.subf %18, %19 : vector<1x256xf32>
    %21 = math.exp %20 : vector<1x256xf32>
    %cst_10 = arith.constant 0.000000e+00 : f32
    %22 = vector.shape_cast %4 : vector<4x1xf32> to vector<4x1xf32>
    %23 = vector.broadcast %22 : vector<4x1xf32> to vector<4x256xf32>
    %24 = vector.broadcast %cst_10 : f32 to vector<4x256xf32>
    %25 = arith.select %14, %23, %24 : vector<4x256xi1>, vector<4x256xf32>
    %cst_11 = arith.constant dense<0.000000e+00> : vector<256xf32>
    %26 = vector.multi_reduction <add>, %25, %cst_11 [0] : vector<4x256xf32> to vector<256xf32>
    %27 = vector.shape_cast %26 : vector<256xf32> to vector<1x256xf32>
    %28 = arith.mulf %20, %27 : vector<1x256xf32>
    %cst_12 = arith.constant 1.000000e+00 : f32
    %29 = vector.broadcast %cst_12 : f32 to vector<1x256xf32>
    %30 = arith.subf %29, %21 : vector<1x256xf32>
    %cst_13 = arith.constant 0.000000e+00 : f32
    %31 = vector.broadcast %cst_13 : f32 to vector<1x256xf32>
    %32 = arith.maximumf %30, %31 : vector<1x256xf32>
    %33 = arith.mulf %32, %32 : vector<1x256xf32>
    %34 = arith.mulf %33, %28 : vector<1x256xf32>
    %cst_14 = arith.constant 0.000000e+00 : f32
    %35 = vector.broadcast %cst_14 : f32 to vector<1x256xf32>
    %36 = arith.subf %35, %34 : vector<1x256xf32>
    %37 = vector.shape_cast %36 : vector<1x256xf32> to vector<1x1x256xf32>
    %cst_15 = arith.constant dense<0.000000e+00> : vector<1xf32>
    %38 = vector.multi_reduction <add>, %37, %cst_15 [1, 2] : vector<1x1x256xf32> to vector<1xf32>
    %39 = vector.shape_cast %38 : vector<1xf32> to vector<1x1x1xf32>
    %40 = vector.extract %39[0, 0, 0] : f32 from vector<1x1x1xf32>
    %41 = vector.broadcast %40 : f32 to vector<1x1x1x1xf32>
    %42 = vector.shape_cast %41 : vector<1x1x1x1xf32> to vector<1x1x1x1xf32>
    %43 = vector.broadcast %42 : vector<1x1x1x1xf32> to vector<1x1x8x128xf32>
    %c0_16 = arith.constant 0 : index
    %c0_17 = arith.constant 0 : index
    %c0_18 = arith.constant 0 : index
    %c0_19 = arith.constant 0 : index
    %44 = vector.load %arg5[%c0_16, %c0_17, %c0_18, %c0_19] : memref<1x1x8x128xf32, #tpu.memory_space<vmem>>, vector<1x1x8x128xf32>
    tpu.vector_store %arg5[%c0_16, %c0_17, %c0_18, %c0_19], %43 {strides = array<i32>} : memref<1x1x8x128xf32, #tpu.memory_space<vmem>>, vector<1x1x8x128xf32>,
    return
  }
  func.func @transform_0(%arg0: i32, %arg1: i32) -> (i32, i32, i32) {
    %c0_i32 = arith.constant 0 : i32
    %c0_i32_0 = arith.constant 0 : i32
    return %arg0, %c0_i32, %arg1 : i32, i32, i32
  }
  func.func @transform_1(%arg0: i32, %arg1: i32) -> (i32, i32, i32) {
    %c0_i32 = arith.constant 0 : i32
    %c0_i32_0 = arith.constant 0 : i32
    return %arg0, %c0_i32, %arg1 : i32, i32, i32
  }
  func.func @transform_2(%arg0: i32, %arg1: i32) -> (i32, i32) {
    %c0_i32 = arith.constant 0 : i32
    %c0_i32_0 = arith.constant 0 : i32
    %c0_i32_1 = arith.constant 0 : i32
    return %c0_i32, %c0_i32_0 : i32, i32
  }
  func.func @transform_3(%arg0: i32, %arg1: i32) -> (i32, i32, i32, i32) {
    %c0_i32 = arith.constant 0 : i32
    %c0_i32_0 = arith.constant 0 : i32
    %c0_i32_1 = arith.constant 0 : i32
    return %arg0, %arg1, %c0_i32, %c0_i32_0 : i32, i32, i32, i32
  }
}

</mosaic_0001>

<bundles_post_ra>
// kernel: tpu_custom_call.1
= control target key start
LH: loop header
LB: loop body
LE: loop exit
PB: predicated region body
PF: predicated region fallthrough
CT: control target
= control target key end

     0   :  { %8 = vsyncpa [#allocation3], 0  ;;  %s875_s0 = inlined_call_operand.hbm [shape: f32[2,4,256], index: 0, kind: input, shape index: {}]   ;;  %s876_s1 = inlined_call_operand.vmem [shape: s32[2,1,256], index: 1, kind: input, shape index: {}]   ;;  %s877_s2 = inlined_call_operand.vmem [shape: f32[4,1], index: 2, kind: input, shape index: {}]   ;;  %s878_s3 = inlined_call_operand.hbm [shape: f32[2,1,8,128], index: 3, kind: output, shape index: {}]  }
   0x1   :  { %10 = vsyncpa [#allocation3 + $0x1], 0 }
   0x2   :  { %11 = vsyncpa [#allocation4], 0 }
   0x3   :  { %13 = vsyncpa [#allocation4 + $0x1], 0  ;;  %s711_s12 = smov 0   ;;  %s713_s13 = smov 0  }
   0x4   :  { %s715_s14 = smov 0   ;;  %s717_s15 = smov 0  }
   0x5   :  { %s719_s16 = smov 0   ;;  %s721_s17 = smov 0  }
   0x6 LB: > { %s485_s18 = sadd.s32 4294967295, %s686_s17   ;;  %s486_s19 = sadd.s32 4294967294, %s686_s17   ;;  %s686_s17 = sphi %s721_s17, %s19_s17   ;;  %s682_s16 = sphi %s719_s16, %s890_s16   ;;  %s678_s15 = sphi %s717_s15, %s889_s15   ;;  %s674_s14 = sphi %s715_s14, %s888_s14   ;;  %s670_s13 = sphi %s713_s13, %s887_s13   ;;  %s666_s12 = sphi %s711_s12, %s886_s12  }
   0x7   : > { %s31_s20 = sadd.s32 1, %s682_s16  ;;  %s40_s21 = sadd.s32 1, %s674_s14 }
   0x8   : > { %p33_p0 = scmp.ge.s32.totalorder %s31_s20, 2  ;;  %p47_p1 = scmp.ne.s32.totalorder %s674_s14, %s670_s13 }
   0x9   : > { %p48_p2 = scmp.eq.s32.totalorder %s686_s17, 0  ;;  %p53_p3 = scmp.ne.s32.totalorder %s670_s13, %s666_s12 }
   0xa   : > { %s892_s20 = smov (%p33_p0, %s31_s20), 0  ;;  %p54_p5 = scmp.eq.s32.totalorder %s485_s18, 0 }
   0xb   : > { %p752_p4 = por %p48_p2, %p47_p1  ;;  %s35_s23 = ssub.s32 %s682_s16, %s892_s20 }
   0xc   : > { %p128_p6 = scmp.eq.s32.totalorder %s485_s18, 1  ;;  %p38_p7 = scmp.eq.s32.totalorder %s35_s23, 0 }
   0xd   : > { %p758_p8 = por %p54_p5, %p53_p3  ;;  %p134_p10 = scmp.eq.s32.totalorder %s486_s19, 1 }
   0xe   : > { %p762_p9 = por %p128_p6, %p47_p1  ;;  %p515_p13 = scmp.lt.s32.totalorder %s686_s17, 2 }
   0xf   : > { %s767_s26 = scalar_select %p38_p7, %s674_s14, %s40_s21  }
  0x10   : > { %p769_p11 = por %p134_p10, %p53_p3  ;;  %s157_s28 = sand.u32 1, %s674_s14  }
  0x11   : > { %s489_s29 = sshll.u32 %s157_s28, 3  ;;  %s500_s30 = sshll.u32 %s682_s16, 7 }
  0x12   : > { %s882_s27 = scalar_select %p769_p11, 1, 0 }
  0x13   : > { %s169_s6 = scalar_lea.hbm %s875_s0, %s500_s30  ;;  %s161_s7 = scalar_lea.vmem [#allocation2], %s489_s29 }
  0x14   : > { %s171_s8 = sshll.u32 %s161_s7, 4  ;;  %p782_p0 = pnand %p515_p13, %p752_p4  ;;  %s172_s8 = int_to_ptr.vmem [resolvable:$true] %s171_s8 }
  0x15   : > { %p492_p1 = scmp.ge.s32.totalorder %s686_s17, 1  ;;  %p188_p2 = scmp.lt.s32.totalorder %s686_s17, 3 }
  0x16   : > { %s158_s10 = scalar_lea.sflag [#allocation3], %s157_s28  ;;  %p580_p3 = pneg %p782_p0 }
  0x17   : > { %s591_s11 = scalar_lea.vmem %s172_s8, 128  ;;  %s688_s18 = smov [#allocation2]  }
  0x18   : > { %p592_p5 = scmp.ne.s32.totalorder %s172_s8, %s591_s11  ;;  %s596_s19 = sshll.u32 %s688_s18, 4  ;;  %s597_s19 = int_to_ptr.vmem [resolvable:$false] %s596_s19 }
  0x19   : > { %s598_s21 = scalar_lea.vmem %s597_s19, 256  ;;  %p599_p10 = scmp.lt.s32.totalorder %s172_s8, %s597_s19 }
  0x1a   : > { %p594_p6 = pnand %p592_p5, %p580_p3  ;;  %p600_p12 = scmp.lt.s32.totalorder %s598_s21, %s591_s11 }
  0x1c   : > { %p595_p7 = pneg %p594_p6  ;;  %p601_p4 = por %p600_p12, %p599_p10 }
  0x1e   : > { %p602_p13 = pnand %p601_p4, %p595_p7 }
  0x20   : > { %605 = shalt.err (!%p602_p13)
}
  0x21   : > { %510 = dma.hbm_to_vmem [thread:$0]  (!%p782_p0), %s169_s6, 128, %s172_s8, %s158_s10  }
  0x22   : > { %p189_p11 = pnand %p492_p1, %p188_p2 }
  0x23   : > { %s797_s22 = sand.u32 (!%p189_p11), 1, %s670_s13  }
  0x24   : > { %192 = sbr.rel (%p189_p11) target bundleno = 405 (0x195), region = 32  ;;  %s493_s23 = sshll.u32 (!%p189_p11), %s797_s22, 3 }
  0x25   : > { %s195_s28 = scalar_lea.sflag (!%p189_p11), [#allocation3], %s797_s22  ;;  %s198_s29 = scalar_lea.vmem (!%p189_p11), [#allocation2], %s493_s23 }
  0x29   : > { %657 = dma.done.wait (%p758_p8), %s195_s28, 128  }
  0x2a   : > { %659 = vsyncadd (%p758_p8), %s195_s28, 4294967168  ;;  %v689_v0 = vmov 0   ;;  %vm245_vm0 = vcmask 1043456   ;;  %v241_v1 = vld [vmem:[%s877_s2] sm:$0xf]  ;;  %p231_p8 = scmp.lt.s32.totalorder %s678_s15, 1  ;;  %v284_v23 = vlaneseq }
  0x2b   : > { %566 = vset.pattern.permute.xlu0 %v689_v0  ;;  %v239_v2 = vld [vmem:[%s198_s29] sm:$0xff]  ;;  %vm358_vm3 = vcmask 1040384   ;;  %s228_s9 = scalar_lea.vmem [#allocation5], %s493_s23  ;;  %s497_s11 = sshll.u32 %s678_s15, 7 }
  0x2c   : > { %327 = vperm.xlu0 %566, %v241_v1   ;;  %v243_v3 = vcombine.high %v239_v2, %v239_v2  ;;  %v246_v4 = vsel %vm245_vm0, %v239_v2, -inf  ;;  %s232_s24 = scalar_select %p231_p8, %s678_s15, 1  ;;  %v285_v26 = vshrl.u32 %v284_v23, 7 }
  0x2d   : > { %v247_v5 = vrot.slane %v246_v4, 4  ;;  %s388_s10 = sshll.u32 %s228_s9, 4  ;;  %s386_s28 = scalar_lea.hbm %s878_s3, %s497_s11  ;;  %s830_s10 = int_to_ptr.vmem [resolvable:$true] %s388_s10 }
  0x2e   : > { %v253_v6 = vsel %vm245_vm0, %v243_v3, -inf  ;;  %s495_s5 = sshll.u32 %s232_s24, 1  ;;  %v288_v29 = vsub.s32 0, %v285_v26  ;;  %v292_v30 = vsub.s32 1, %v285_v26  ;;  %s374_s29 = scalar_lea.sflag [#allocation4], %s797_s22 }
  0x2f   : > { %v254_v7 = vrot.slane %v253_v6, 4  ;;  %v248_v8 = vmax.f32 %v246_v4, %v247_v5  ;;  %s237_s8 = scalar_lea.vmem %s876_s1, %s495_s5  ;;  %s606_s30 = scalar_lea.vmem %s830_s10, 128 }
  0x30   : > { %v240_v31 = vld [vmem:[%s237_s8] sm:$0x3]  ;;  %p607_p11 = scmp.ne.s32.totalorder %s830_s10, %s606_s30  ;;  %s690_s23 = smov [#allocation5]  }
  0x31   : > { %v255_v9 = vmax.f32 %v253_v6, %v254_v7  ;;  %v249_v10 = vrot.slane %v248_v8, 2  ;;  %v289_v34 = vrot.slane %v240_v31, %v288_v29  ;;  %v293_v35 = vrot.slane %v240_v31, %v292_v30  ;;  %s610_s15 = sshll.u32 %s690_s23, 4  ;;  %s611_s15 = int_to_ptr.vmem [resolvable:$false] %s610_s15 }
  0x32   : > { %p608_p12 = pnand %p607_p11, %p762_p9  ;;  %s612_s4 = scalar_lea.vmem %s611_s15, 256 }
  0x33   : > { %v256_v11 = vrot.slane %v255_v9, 2  ;;  %v250_v12 = vmax.f32 %v248_v8, %v249_v10  ;;  %vm294_vm1 = vcmp.eq.s32.totalorder %v285_v26, %v289_v34  ;;  %vm295_vm2 = vcmp.eq.s32.totalorder %v285_v26, %v293_v35  ;;  %p613_p1 = scmp.lt.s32.totalorder %s830_s10, %s611_s15  ;;  %p614_p2 = scmp.lt.s32.totalorder %s612_s4, %s606_s30 }
  0x34   : > { %p609_p0 = pneg %p608_p12 }
  0x35   : > { %v257_v13 = vmax.f32 %v255_v9, %v256_v11  ;;  %v251_v14 = vrot.slane %v250_v12, 1  ;;  %p615_p3 = por %p614_p2, %p613_p1 }
  0x37   : > { %v258_v15 = vrot.slane %v257_v13, 1  ;;  %v252_v16 = vmax.f32 %v250_v12, %v251_v14  ;;  %p616_p5 = pnand %p615_p3, %p609_p0 }
  0x39   : > { %v259_v17 = vmax.f32 %v257_v13, %v258_v15 }
  0x3b   : > { %v262_v18 = vcombine.low %v252_v16, %v259_v17 }
  0x3d   : > { %v264_v19 = vsub.f32 %v239_v2, %v262_v18 }
  0x3f   : > { %v265_v20 = vmul.f32 1.442695, %v264_v19  ;;  %v297_v38 = vcombine.high %v264_v19, %v264_v19  ;;  %v299_v41 = vsel %vm294_vm1, %v264_v19, 0.0 }
  0x40   : > { %v301_v44 = vsel %vm245_vm0, %v299_v41, 0.0 }
  0x41   : > { %568 = vpow2.f32 %v265_v20  ;;  %v300_v42 = vsel %vm295_vm2, %v297_v38, 0.0  ;;  %v302_v47 = vrot.slane %v301_v44, 4 }
  0x42   : > { %v308_v46 = vsel %vm245_vm0, %v300_v42, 0.0 }
  0x43   : > { %v309_v49 = vrot.slane %v308_v46, 4  ;;  %v303_v51 = vadd.f32 %v302_v47, %v301_v44 }
  0x45   : > { %v310_v52 = vadd.f32 %v309_v49, %v308_v46  ;;  %v304_v53 = vrot.slane %v303_v51, 2 }
  0x47   : > { %v311_v54 = vrot.slane %v310_v52, 2  ;;  %v305_v55 = vadd.f32 %v304_v53, %v303_v51 }
  0x49   : > { %v312_v56 = vadd.f32 %v311_v54, %v310_v52  ;;  %v306_v57 = vrot.slane %v305_v55, 1 }
  0x4b   : > { %v313_v59 = vrot.slane %v312_v56, 1  ;;  %v307_v61 = vadd.f32 %v306_v57, %v305_v55 }
  0x4d   : > { %v314_v63 = vadd.f32 %v313_v59, %v312_v56 }
  0x4e   : > { %v569_v21 = vpop.eup %568 }
  0x4f   : > { %v268_v22 = vcombine.high %v569_v21, %v569_v21  ;;  %v270_v24 = vsel %vm245_vm0, %v569_v21, 0.0 }
  0x50   : > { %v271_v27 = vrot.slane %v270_v24, 4 }
  0x51   : > { %v277_v25 = vsel %vm245_vm0, %v268_v22, 0.0 }
  0x52   : > { %v278_v28 = vrot.slane %v277_v25, 4  ;;  %v272_v32 = vadd.f32 %v271_v27, %v270_v24 }
  0x54   : > { %v279_v33 = vadd.f32 %v278_v28, %v277_v25  ;;  %v273_v36 = vrot.slane %v272_v32, 2 }
  0x56   : > { %v280_v37 = vrot.slane %v279_v33, 2  ;;  %v274_v39 = vadd.f32 %v273_v36, %v272_v32 }
  0x58   : > { %v281_v40 = vadd.f32 %v280_v37, %v279_v33  ;;  %v275_v43 = vrot.slane %v274_v39, 1 }
  0x5a   : > { %v282_v45 = vrot.slane %v281_v40, 1  ;;  %v276_v48 = vadd.f32 %v275_v43, %v274_v39 }
  0x5c   : > { %v283_v50 = vadd.f32 %v282_v45, %v281_v40  ;;  %570 = vlog2.f32 %v276_v48 }
  0x5e   : > { %572 = vlog2.f32 %v283_v50 }
  0x69   : > { %v571_v58 = vpop.eup %570 }
  0x6a   : > { %v316_v62 = vmul.f32 0.6931472, %v571_v58 }
  0x6b   : > { %v573_v60 = vpop.eup %572 }
  0x6c   : > { %v318_v0 = vmul.f32 0.6931472, %v573_v60  ;;  %v319_v1 = vsub.f32 %v307_v61, %v316_v62 }
  0x6e   : > { %v320_v2 = vsub.f32 %v314_v63, %v318_v0  ;;  %v321_v3 = vmul.f32 1.442695, %v319_v1 }
  0x70   : > { %v323_v4 = vmul.f32 1.442695, %v320_v2  ;;  %574 = vpow2.f32 %v321_v3 }
  0x72   : > { %576 = vpow2.f32 %v323_v4 }
  0x7d   : > { %v575_v6 = vpop.eup %574 }
  0x7e   : > { %v348_v16 = vsub.f32 1.0, %v575_v6 }
  0x7f   : > { %v577_v9 = vpop.eup %576 }
  0x80   : > { %v349_v17 = vsub.f32 1.0, %v577_v9  ;;  %v350_v22 = vmax.f32 %v348_v16, 0.0 }
  0x82   : > { %v351_v23 = vmax.f32 %v349_v17, 0.0  ;;  %v352_v28 = vmul.f32 %v350_v22, %v350_v22 }
  0x84   : > { %v353_v29 = vmul.f32 %v351_v23, %v351_v23 }
  0xa7   : > { %v328_v5 = vpop.permute.xlu0 %327 }
  0xa8   : > { %v330_v7 = vsel %vm294_vm1, %v328_v5, 0.0  ;;  %v331_v8 = vsel %vm295_vm2, %v328_v5, 0.0 }
  0xa9   : > { %v332_v10 = vsel %vm245_vm0, %v330_v7, 0.0  ;;  %v339_v11 = vsel %vm245_vm0, %v331_v8, 0.0 }
  0xaa   : > { %v333_v12 = vrot.slane %v332_v10, 4  ;;  %v340_v13 = vrot.slane %v339_v11, 4 }
  0xac   : > { %v334_v14 = vadd.f32 %v333_v12, %v332_v10  ;;  %v341_v15 = vadd.f32 %v340_v13, %v339_v11 }
  0xae   : > { %v335_v18 = vrot.slane %v334_v14, 2  ;;  %v342_v19 = vrot.slane %v341_v15, 2 }
  0xb0   : > { %v336_v20 = vadd.f32 %v335_v18, %v334_v14  ;;  %v343_v21 = vadd.f32 %v342_v19, %v341_v15 }
  0xb2   : > { %v337_v24 = vrot.slane %v336_v20, 1  ;;  %v344_v25 = vrot.slane %v343_v21, 1 }
  0xb4   : > { %v338_v26 = vadd.f32 %v337_v24, %v336_v20  ;;  %v345_v27 = vadd.f32 %v344_v25, %v343_v21 }
  0xb6   : > { %v346_v30 = vmul.f32 %v338_v26, %v319_v1  ;;  %v347_v31 = vmul.f32 %v345_v27, %v320_v2 }
  0xb8   : > { %v354_v32 = vmul.f32 %v352_v28, %v346_v30  ;;  %v355_v33 = vmul.f32 %v353_v29, %v347_v31 }
  0xba   : > { %v356_v34 = vsub.f32 0.0, %v354_v32  ;;  %v357_v35 = vsub.f32 0.0, %v355_v33 }
  0xbc   : > { %v359_v36 = vsel %vm358_vm3, %v356_v34, 0.0  ;;  %v360_v37 = vsel %vm358_vm3, %v357_v35, 0.0 }
  0xbd   : > { %v361_v38 = vadd.f32 %v360_v37, %v359_v36 }
  0xbf   : > { %362 = vadd.xlane.f32.xlu0 %v361_v38 }
 0x148   : > { %v363_v39 = vpop.xlane.xlu0 %362 }
 0x149   : > { %v364_v40 = vrot.slane %v363_v39, 4 }
 0x14b   : > { %v365_v41 = vadd.f32 %v364_v40, %v363_v39 }
 0x14d   : > { %v366_v42 = vrot.slane %v365_v41, 2 }
 0x14f   : > { %v367_v43 = vadd.f32 %v366_v42, %v365_v41 }
 0x151   : > { %v368_v44 = vrot.slane %v367_v43, 1 }
 0x153   : > { %v369_v45 = vadd.f32 %v368_v44, %v367_v43 }
 0x155   : > { %501 = vpush %v369_v45 }
 0x186   : > { %s502_s18 = spop %501 }
 0x187   : > { %v371_v46 = vstv %s502_s18 }
 0x188   : > { %372 = vst [vmem:[%s228_s9] sm:$0xff] %v371_v46 }
 0x189   : > { %619 = shalt.err (!%p616_p5)
}
 0x18a   : > { %s620_s24 = scalar_lea.hbm %s386_s28, 128  ;;  %s624_s6 = scalar_lea.hbm %s878_s3, 256 }
 0x18b   : > { %p621_p6 = scmp.ne.s32.totalorder %s386_s28, %s620_s24  ;;  %p625_p4 = scmp.lt.s32.totalorder %s386_s28, %s878_s3 }
 0x18c   : > { %p626_p13 = scmp.lt.s32.totalorder %s624_s6, %s620_s24 }
 0x18d   : > { %p622_p7 = pnand %p621_p6, %p762_p9 }
 0x18e   : > { %p627_p8 = por %p626_p13, %p625_p4 }
 0x18f   : > { %p623_p10 = pneg %p622_p7 }
 0x191   : > { %p628_p11 = pnand %p627_p8, %p623_p10 }
 0x193   : > { %631 = shalt.err (!%p628_p11)
}
 0x194   : > { %505 = dma.vmem_to_hbm [thread:$0]  (%p762_p9), %s830_s10, 128, %s386_s28, %s374_s29  }
 0x195 PF: > { %s400_s9 = sand.u32 1, %s666_s12   ;;  %p884_p12 = scmp.ne.s32.totalorder %s882_s27, 0 }
 0x196   : > { %p885_p0 = scmp.ge.s32.totalorder %s686_s17, 2  ;;  %s401_s11 = scalar_lea.sflag [#allocation4], %s400_s9 }
 0x198   : > { %p512_p1 = pnand %p885_p0, %p884_p12 }
 0x19a   : > { %p513_p2 = pneg %p512_p1 }
 0x19c   : > { %661 = dma.done.wait (%p513_p2), %s401_s11, 128  }
 0x19d   : > { %663 = vsyncadd (%p513_p2), %s401_s11, 4294967168  ;;  %s19_s17 = sadd.s32 1, %s686_s17   ;;  %s886_s12 = smov %s670_s13 }
 0x19e   : > { %p16_p3 = scmp.ge.s32.totalorder %s19_s17, 4   ;;  %s887_s13 = smov %s674_s14 }
 0x19f   : > { %s888_s14 = smov %s767_s26  ;;  %s889_s15 = smov %s682_s16 }
 0x1a0   : > { %s890_s16 = smov %s892_s20  ;;  %18 = sbr.rel (!%p16_p3) target bundleno = 6 (0x6), region = 80 }
 0x1a5   :  { %406 = vsyncpa [#allocation3], 1 }
 0x1a6   :  { %408 = vsyncpa [#allocation3 + $0x1], 1 }
 0x1a7   :  { %409 = vsyncpa [#allocation4], 1 }
 0x1a8   :  { %411 = vsyncpa [#allocation4 + $0x1], 1 }

</bundles_post_ra>
